<compile_context>
chip_gen: v6e
topology: v6e:2x2x1
jax: 0.10.0
libtpu: 0.0.40
codegen_flags: <defaults>
</compile_context>

<pallas_src>
import functools
import math

import numpy as np
import jax
import jax.numpy as jnp
from jax.experimental import pallas as pl
from jax.experimental.pallas import tpu as pltpu

D_MODEL = 64
NUM_KERNELS = 6                         # Inception_Block_V1 num_kernels
K_TOP = 5                               # TimesBlock top-k periods
K_CONV = 2 * (NUM_KERNELS - 1) + 1      # combined kernel size = 11
PAD = NUM_KERNELS - 1                   # "same" padding = 5
LN_EPS = 1e-5
_SQRT_HALF = 0.7071067811865476


def _round_up(a, b):
    return (a + b - 1) // b * b


# ------------------------- in-kernel math helpers -------------------------

def _erf_approx(x):
    # Abramowitz & Stegun 7.1.26 (|err| <= 1.5e-7): exact-GELU semantics within
    # f32 noise, using only VPU/EUP ops that lower on v5e/v6e/v7x.
    a1, a2, a3, a4, a5 = (0.254829592, -0.284496736, 1.421413741,
                          -1.453152027, 1.061405429)
    p = 0.3275911
    sgn = jnp.where(x >= 0.0, 1.0, -1.0)
    ax = jnp.abs(x)
    t = 1.0 / (1.0 + p * ax)
    poly = ((((a5 * t + a4) * t + a3) * t + a2) * t + a1) * t
    return sgn * (1.0 - poly * jnp.exp(-ax * ax))


def _gelu(x):
    return 0.5 * x * (1.0 + _erf_approx(x * _SQRT_HALF))


# ----------------------------- Pallas kernels -----------------------------

def _fused_conv_kernel(x_ref, w1_ref, b1_ref, w2_ref, b2_ref, m_ref,
                       o_ref, p_ref, s_ref, *, H, W, Wp, M1p, TM, NS):
    """Fused Inception(11x11) -> GELU -> Inception(11x11) on one batch element.

    x_ref : (H*W, 64) f32       raw (un-padded) feature map, row-major
    w*_ref: (11, 704, 64) bf16  per-kh weights, 11 kw taps stacked along K
    b*_ref: (1, 64) f32
    m_ref : (M1p, 1) f32        1.0 where flat output row is a real pixel
    o_ref : (MO, 64) f32        flat conv2 output (valid cols extracted outside)
    p_ref : (NP, 64) bf16       zero-haloed padded image (reused for GELU(conv1))
    s_ref : (NS, 704) bf16      kw-concatenated slab
    """
    C = D_MODEL
    S0 = PAD * Wp + PAD          # flat offset of pixel (0, 0) inside the halo

    # The scratch persists across the (sequential) batch grid; each iteration
    # only overwrites interior rows / masked rows, so the zero halo only needs
    # to be established once.
    @pl.when(pl.program_id(0) == 0)
    def _():
        p_ref[...] = jnp.zeros_like(p_ref)

    # Stage the raw f32 input into the zero-haloed bf16 padded image (VMEM only).
    for h in range(H):
        d0 = (PAD + h) * Wp + PAD
        p_ref[d0:d0 + W, :] = x_ref[h * W:(h + 1) * W, :].astype(p_ref.dtype)

    def build_slab():
        # S[r, kw*64:(kw+1)*64] = P[r + kw]  (11 shifted column-block copies)
        for kw in range(K_CONV):
            s_ref[:, kw * C:(kw + 1) * C] = p_ref[kw:kw + NS, :]

    def conv_pass(w_ref, b_ref, is_first):
        # M-tiled accumulation: per chunk the f32 accumulator is TM x 64
        # (<= 16 vregs) and the 11 K=704 matmul operand slices are
        # sublane-aligned views of the slab (Wp % 16 == 0, TM % 16 == 0).
        for m in range(M1p // TM):
            r0 = m * TM
            acc = jnp.zeros((TM, C), jnp.float32)
            for kh in range(K_CONV):
                acc = acc + jnp.dot(
                    s_ref[r0 + kh * Wp:r0 + kh * Wp + TM, :], w_ref[kh],
                    preferred_element_type=jnp.float32)
            acc = acc + b_ref[...]
            if is_first:
                # GELU, zero garbage rows, write back as conv2's padded input
                # (mask==0 rows are exactly the halo cells of the padded image,
                # so the zero halo is preserved without any extra zero fill).
                y = _gelu(acc) * m_ref[r0:r0 + TM, :]
                p_ref[S0 + r0:S0 + r0 + TM, :] = y.astype(p_ref.dtype)
            else:
                o_ref[r0:r0 + TM, :] = acc

    build_slab()                            # slab of the input image
    conv_pass(w1_ref, b1_ref, True)         # conv1 + GELU  -> back into p_ref
    build_slab()                            # slab of GELU(conv1(x) + b1)
    conv_pass(w2_ref, b2_ref, False)        # conv2 + bias  -> o_ref


def _embed_kernel(cols_ref, w_ref, pe_ref, o_ref):
    """TokenEmbedding (circular Conv1d(1,64,3,bias=False)) + positional emb."""
    c = cols_ref[...].astype(jnp.float32)        # (T, 3)
    w = w_ref[...]                               # (3, 64)
    o_ref[...] = (c[:, 0:1] * w[0:1, :]
                  + c[:, 1:2] * w[1:2, :]
                  + c[:, 2:3] * w[2:3, :]
                  + pe_ref[...])


def _ln_gelu_kernel(x_ref, g_ref, b_ref, o_ref):
    """LayerNorm(64) fused with the subsequent exact GELU (self.act)."""
    # TODO(synk): lane-densify to a (M/2, 128) view (two d=64 rows per vreg row)
    # to avoid half-empty 128-lane vregs; left as-is (kernel is a small fraction
    # of total runtime).
    x = x_ref[...].astype(jnp.float32)
    mu = jnp.mean(x, axis=-1, keepdims=True)
    xc = x - mu
    var = jnp.mean(xc * xc, axis=-1, keepdims=True)
    y = xc * jax.lax.rsqrt(var + LN_EPS) * g_ref[...] + b_ref[...]
    o_ref[...] = _gelu(y).astype(o_ref.dtype)


def _proj_kernel(x_ref, w_ref, b_ref, o_ref):
    """nn.Linear(64*T, 1) as a VPU multiply + lane reduction (no MXU padding)."""
    o_ref[...] = (jnp.sum(x_ref[...] * w_ref[...], axis=-1, keepdims=True)
                  + b_ref[...])


# ----------------------------- kernel wrappers -----------------------------

def fused_inception(x_flat, H, W, w1, b1, w2, b2):
    """conv1 -> GELU -> conv2 on (B, H*W, 64) f32 row-major maps -> (B,H,W,64)."""
    B, HW, C = x_flat.shape
    assert HW == H * W and C == D_MODEL
    Wp = _round_up(W + 2 * PAD, 16)      # aligned padded width (bf16 sublanes)
    M1 = (H - 1) * Wp + W                # flat rows covering every valid pixel
    TM = 256 if M1 >= 256 else _round_up(M1, 16)
    M1p = _round_up(M1, TM)              # chunk-rounded flat row count
    NS = M1p + (K_CONV - 1) * Wp         # slab rows (max row any chunk reads)
    NP = NS + 16                         # padded-image rows (>= NS + K_CONV-1)
    MO = max(M1p, H * Wp)                # output rows (reshapeable to (H, Wp))

    # validity mask over flat rows: 1.0 iff the row is a real pixel (col < W)
    mask = np.zeros((M1p, 1), np.float32)
    mask[:M1, 0] = (np.arange(M1) % Wp < W)
    mask = jnp.asarray(mask)

    kern = functools.partial(_fused_conv_kernel, H=H, W=W, Wp=Wp,
                             M1p=M1p, TM=TM, NS=NS)
    out = pl.pallas_call(
        kern,
        out_shape=jax.ShapeDtypeStruct((B, MO, C), jnp.float32),
        grid_spec=pltpu.PrefetchScalarGridSpec(
            num_scalar_prefetch=0,
            grid=(B,),
            in_specs=[
                pl.BlockSpec((None, HW, C), lambda b: (b, 0, 0)),
                # constant-index weights are DMA'd once per call.
                # TODO(synk): pipeline_mode=pl.Buffered(1) would also drop the
                # second (unused) VMEM buffer for these constant streams.
                pl.BlockSpec((K_CONV, K_CONV * C, C), lambda b: (0, 0, 0)),
                pl.BlockSpec((1, C), lambda b: (0, 0)),
                pl.BlockSpec((K_CONV, K_CONV * C, C), lambda b: (0, 0, 0)),
                pl.BlockSpec((1, C), lambda b: (0, 0)),
                pl.BlockSpec((M1p, 1), lambda b: (0, 0)),
            ],
            out_specs=pl.BlockSpec((None, MO, C), lambda b: (b, 0, 0)),
            scratch_shapes=[pltpu.VMEM((NP, C), jnp.bfloat16),
                            pltpu.VMEM((NS, K_CONV * C), jnp.bfloat16)]),
        # Batch axis must be "arbitrary" (in-order, one core) so the
        # once-zeroed halo scratch stays valid across grid steps.
        # TODO(synk): per-iteration halo-only zeroing would allow a "parallel"
        # batch / M-tile grid for v7x's two TensorCores.
        compiler_params=pltpu.CompilerParams(
            dimension_semantics=("arbitrary",),
            vmem_limit_bytes=48 * 1024 * 1024),
    )(x_flat, w1, b1, w2, b2, mask)

    # valid pixels sit at flat rows h*Wp + w with w < W; drop alignment garbage
    return out[:, :H * Wp, :].reshape(B, H, Wp, C)[:, :, :W, :]


def pallas_token_embed(cols, tok_w, pe):
    B, T, _ = cols.shape
    return pl.pallas_call(
        _embed_kernel,
        out_shape=jax.ShapeDtypeStruct((B, T, D_MODEL), jnp.float32),
        grid_spec=pltpu.PrefetchScalarGridSpec(
            num_scalar_prefetch=0,
            grid=(B,),
            in_specs=[
                pl.BlockSpec((None, T, 3), lambda b: (b, 0, 0)),
                pl.BlockSpec((3, D_MODEL), lambda b: (0, 0)),
                pl.BlockSpec((T, D_MODEL), lambda b: (0, 0)),
            ],
            out_specs=pl.BlockSpec((None, T, D_MODEL), lambda b: (b, 0, 0))),
        compiler_params=pltpu.CompilerParams(
            dimension_semantics=("parallel",)),
    )(cols, tok_w, pe)


def pallas_layernorm_gelu(x, gamma, beta):
    """Row-wise LayerNorm(64) + exact GELU.  x: (M, 64) f32."""
    M, N = x.shape
    tm = min(1024, _round_up(M, 8))
    Mp = _round_up(M, tm)
    xp = x if Mp == M else jnp.pad(x, ((0, Mp - M), (0, 0)))
    out = pl.pallas_call(
        _ln_gelu_kernel,
        out_shape=jax.ShapeDtypeStruct((Mp, N), jnp.float32),
        grid_spec=pltpu.PrefetchScalarGridSpec(
            num_scalar_prefetch=0,
            grid=(Mp // tm,),
            in_specs=[
                pl.BlockSpec((tm, N), lambda i: (i, 0)),
                pl.BlockSpec((1, N), lambda i: (0, 0)),
                pl.BlockSpec((1, N), lambda i: (0, 0)),
            ],
            out_specs=pl.BlockSpec((tm, N), lambda i: (i, 0))),
        compiler_params=pltpu.CompilerParams(
            dimension_semantics=("parallel",)),
    )(xp, gamma, beta)
    return out if Mp == M else out[:M]


def pallas_project(x, w_row, b):
    """y = x @ w_row.T + b as a VPU reduction.  x: (B, K), w_row: (1, K)."""
    B, K = x.shape
    return pl.pallas_call(
        _proj_kernel,
        out_shape=jax.ShapeDtypeStruct((B, 1), jnp.float32),
        grid_spec=pltpu.PrefetchScalarGridSpec(
            num_scalar_prefetch=0,
            grid=(1,),
            in_specs=[
                pl.BlockSpec((B, K), lambda i: (0, 0)),
                pl.BlockSpec((1, K), lambda i: (0, 0)),
                pl.BlockSpec((1, 1), lambda i: (0, 0)),
            ],
            out_specs=pl.BlockSpec((B, 1), lambda i: (0, 0))),
    )(x, w_row, b)


# ------------------------------- glue (JAX) -------------------------------

def positional_embedding(T, d):
    pos = np.arange(T, dtype=np.float64)[:, None]
    div = np.exp(np.arange(0, d, 2, dtype=np.float64) * -(math.log(10000.0) / d))
    pe = np.zeros((T, d), dtype=np.float32)
    pe[:, 0::2] = np.sin(pos * div)
    pe[:, 1::2] = np.cos(pos * div)
    return jnp.asarray(pe)


def combine_inception(ws, bs):
    """Fold 6 'same' convs (k=1,3,...,11), averaged, into one 11x11 conv."""
    comb = jnp.zeros((K_CONV, K_CONV, D_MODEL, D_MODEL), jnp.float32)
    for i in range(NUM_KERNELS):
        ksz = 2 * i + 1
        off = (K_CONV - ksz) // 2
        comb = comb.at[off:off + ksz, off:off + ksz].add(ws[i])
    comb = comb / NUM_KERNELS
    bias = jnp.mean(jnp.stack(bs, axis=0), axis=0)
    return comb, bias


def fft_for_period(x, k=K_TOP):
    """Mirrors FFT_for_Period: concrete (host) periods + amplitude weights."""
    # TODO(synk): a fully traced variant (fixed-max-shape conv kernel with
    # scalar-prefetched period/offsets) would avoid this host sync and the
    # per-period-shape recompiles; kept host-side to mirror torch's
    # top_list.detach().cpu().numpy().
    T = x.shape[1]
    xf = jnp.fft.rfft(x, axis=1)
    amp = jnp.abs(xf)                               # (B, F, N)
    freq = amp.mean(axis=0).mean(axis=-1)
    freq = freq.at[0].set(0.0)
    _, top = jax.lax.top_k(freq, k)
    top_np = np.asarray(jax.device_get(top))
    periods = [int(T // max(int(i), 1)) for i in top_np]
    period_weight = amp.mean(axis=-1)[:, top_np]    # (B, k)
    return periods, period_weight


def times_block(x, params, k=K_TOP):
    """TimesBlock.forward on (B, T, 64) f32."""
    B, T, N = x.shape
    periods, period_weight = fft_for_period(x, k)
    weights = jax.nn.softmax(period_weight, axis=1)       # (B, k) f32

    res_sum = jnp.zeros_like(x)
    for i in range(k):
        p = periods[i]
        length = T if T % p == 0 else (T // p + 1) * p
        xi = x if length == T else jnp.pad(x, ((0, 0), (0, length - T), (0, 0)))
        H0, W0 = length // p, p
        if W0 >= H0:
            # already wide: the (B, length, N) buffer *is* the row-major image
            y = fused_inception(xi, H0, W0,
                                params["inc1_k"], params["inc1_b"],
                                params["inc2_k"], params["inc2_b"])
            yi = y.reshape(B, length, N)
        else:
            # tall: orient the long axis as conv width (conv of the transposed
            # image with spatially transposed taps == transposed conv output)
            xt = xi.reshape(B, H0, W0, N).transpose(0, 2, 1, 3)
            y = fused_inception(xt.reshape(B, length, N), W0, H0,
                                params["inc1_k_t"], params["inc1_b"],
                                params["inc2_k_t"], params["inc2_b"])
            yi = y.transpose(0, 2, 1, 3).reshape(B, length, N)
        res_sum = res_sum + yi[:, :T, :] * weights[:, i][:, None, None]
    return res_sum + x


def timesnet_forward(x_enc, params, seq_len):
    """TimesNet_Pytorch.forward; x_enc: (B, 1, seq_len) f32 -> (B, 1)."""
    B = x_enc.shape[0]
    T = seq_len

    # DataEmbedding: circular Conv1d(1,64,3,bias=False) + sinusoidal pos emb
    xs = x_enc[:, 0, :]                                   # (B, T)
    cols = jnp.stack([jnp.roll(xs, 1, axis=1), xs, jnp.roll(xs, -1, axis=1)],
                     axis=-1)                             # (B, T, 3)
    enc = pallas_token_embed(cols, params["tok_w"], params["pe"])
    # (dropout(0.1) is identity at inference)

    # single TimesBlock layer, then LayerNorm(64) fused with self.act = F.gelu
    enc = times_block(enc, params)
    out = pallas_layernorm_gelu(enc.reshape(B * T, D_MODEL),
                                params["ln_g"], params["ln_b"])

    # projection nn.Linear(64*T, 1)
    out = out.reshape(B, T * D_MODEL)
    return pallas_project(out, params["proj_w"], params["proj_b"])


def init_params(key, seq_len):
    keys = iter(jax.random.split(key, 32))
    p = {}
    # TokenEmbedding Conv1d(1, 64, 3, bias=False): taps ordered [t-1, t, t+1]
    p["tok_w"] = 0.3 * jax.random.normal(next(keys), (3, D_MODEL), jnp.float32)
    p["pe"] = positional_embedding(seq_len, D_MODEL)
    # Two Inception_Block_V1(64, 64, num_kernels=6) -> combined 11x11 conv,
    # laid out as (11, 11*64, 64) bf16: per-kh weight with the kw taps stacked
    # along K (plus a spatially-transposed copy for tall orientations).
    for name in ("inc1", "inc2"):
        ws, bs = [], []
        for i in range(NUM_KERNELS):
            ksz = 2 * i + 1
            scale = 1.0 / math.sqrt(D_MODEL * ksz * ksz)
            ws.append(scale * jax.random.normal(
                next(keys), (ksz, ksz, D_MODEL, D_MODEL), jnp.float32))
            bs.append(scale * jax.random.normal(next(keys), (D_MODEL,),
                                                jnp.float32))
        comb, bias = combine_inception(ws, bs)            # (11,11,Cin,Cout)
        p[name + "_k"] = comb.reshape(
            K_CONV, K_CONV * D_MODEL, D_MODEL).astype(jnp.bfloat16)
        p[name + "_k_t"] = jnp.transpose(comb, (1, 0, 2, 3)).reshape(
            K_CONV, K_CONV * D_MODEL, D_MODEL).astype(jnp.bfloat16)
        p[name + "_b"] = bias.reshape(1, D_MODEL).astype(jnp.float32)
    # LayerNorm(64)
    p["ln_g"] = (jnp.ones((D_MODEL,), jnp.float32)
                 + 0.1 * jax.random.normal(next(keys), (D_MODEL,), jnp.float32)
                 ).reshape(1, D_MODEL)
    p["ln_b"] = (0.1 * jax.random.normal(next(keys), (D_MODEL,), jnp.float32)
                 ).reshape(1, D_MODEL)
    # projection nn.Linear(64*seq_len, 1)  (original hardcodes 64*699)
    fan = D_MODEL * seq_len
    p["proj_w"] = (1.0 / math.sqrt(fan)) * jax.random.normal(
        next(keys), (1, fan), jnp.float32)
    p["proj_b"] = (1.0 / math.sqrt(fan)) * jax.random.normal(
        next(keys), (1, 1), jnp.float32)
    return p


if __name__ == "__main__":
    B, T = 2, 32
    key = jax.random.PRNGKey(0)
    kx, kp = jax.random.split(key)
    # PyTorch forward expects x_enc of shape (B, c_in=1, seq_len)
    x_enc = jax.random.normal(kx, (B, 1, T), jnp.float32)
    params = init_params(kp, T)

    out = timesnet_forward(x_enc, params, T)
    out = jax.block_until_ready(out)

    assert out.shape == (B, 1), out.shape
    assert bool(jnp.all(jnp.isfinite(out)))
    print("KERNEL_OK")
</pallas_src>

<mosaic_0001>
module attributes {stable_mosaic.version = 11 : i64} {
  func.func @_embed_kernel(%arg0: i32, %arg1: memref<1x32x3xf32, #tpu.memory_space<vmem>>, %arg2: memref<3x64xf32, #tpu.memory_space<vmem>>, %arg3: memref<32x64xf32, #tpu.memory_space<vmem>>, %arg4: memref<1x32x64xf32, #tpu.memory_space<vmem>>) attributes {dimension_semantics = [#tpu.dimension_semantics<parallel>], iteration_bounds = array<i64: 2>, scalar_prefetch = 0 : i64, scratch_operands = 0 : i64, tpu.core_type = #tpu.core_type<tc>, window_params = [{transform_indices = @transform_0, window_bounds = array<i64: 1, 32, 3>}, {pipeline_mode = #tpu.pipeline_mode<synchronous>, transform_indices = @transform_1, window_bounds = array<i64: 3, 64>}, {pipeline_mode = #tpu.pipeline_mode<synchronous>, transform_indices = @transform_2, window_bounds = array<i64: 32, 64>}, {transform_indices = @transform_3, window_bounds = array<i64: 1, 32, 64>}]} {
    %c0 = arith.constant 0 : index
    %c0_0 = arith.constant 0 : index
    %c0_1 = arith.constant 0 : index
    %0 = vector.load %arg1[%c0, %c0_0, %c0_1] : memref<1x32x3xf32, #tpu.memory_space<vmem>>, vector<1x32x3xf32>
    %1 = vector.shape_cast %0 : vector<1x32x3xf32> to vector<32x3xf32>
    %c0_2 = arith.constant 0 : index
    %c0_3 = arith.constant 0 : index
    %2 = vector.load %arg2[%c0_2, %c0_3] : memref<3x64xf32, #tpu.memory_space<vmem>>, vector<3x64xf32>
    %3 = vector.extract_strided_slice %1 {offsets = [0, 0], sizes = [32, 1], strides = [1, 1]} : vector<32x3xf32> to vector<32x1xf32>
    %4 = vector.extract_strided_slice %2 {offsets = [0, 0], sizes = [1, 64], strides = [1, 1]} : vector<3x64xf32> to vector<1x64xf32>
    %5 = vector.broadcast %3 : vector<32x1xf32> to vector<32x64xf32>
    %6 = vector.broadcast %4 : vector<1x64xf32> to vector<32x64xf32>
    %7 = arith.mulf %5, %6 : vector<32x64xf32>
    %8 = vector.extract_strided_slice %1 {offsets = [0, 1], sizes = [32, 1], strides = [1, 1]} : vector<32x3xf32> to vector<32x1xf32>
    %9 = vector.extract_strided_slice %2 {offsets = [1, 0], sizes = [1, 64], strides = [1, 1]} : vector<3x64xf32> to vector<1x64xf32>
    %10 = vector.broadcast %8 : vector<32x1xf32> to vector<32x64xf32>
    %11 = vector.broadcast %9 : vector<1x64xf32> to vector<32x64xf32>
    %12 = arith.mulf %10, %11 : vector<32x64xf32>
    %13 = arith.addf %7, %12 : vector<32x64xf32>
    %14 = vector.extract_strided_slice %1 {offsets = [0, 2], sizes = [32, 1], strides = [1, 1]} : vector<32x3xf32> to vector<32x1xf32>
    %15 = vector.extract_strided_slice %2 {offsets = [2, 0], sizes = [1, 64], strides = [1, 1]} : vector<3x64xf32> to vector<1x64xf32>
    %16 = vector.broadcast %14 : vector<32x1xf32> to vector<32x64xf32>
    %17 = vector.broadcast %15 : vector<1x64xf32> to vector<32x64xf32>
    %18 = arith.mulf %16, %17 : vector<32x64xf32>
    %19 = arith.addf %13, %18 : vector<32x64xf32>
    %c0_4 = arith.constant 0 : index
    %c0_5 = arith.constant 0 : index
    %20 = vector.load %arg3[%c0_4, %c0_5] : memref<32x64xf32, #tpu.memory_space<vmem>>, vector<32x64xf32>
    %21 = arith.addf %19, %20 : vector<32x64xf32>
    %c0_6 = arith.constant 0 : index
    %c0_7 = arith.constant 0 : index
    %c0_8 = arith.constant 0 : index
    %22 = vector.load %arg4[%c0_6, %c0_7, %c0_8] : memref<1x32x64xf32, #tpu.memory_space<vmem>>, vector<1x32x64xf32>
    %23 = vector.shape_cast %22 : vector<1x32x64xf32> to vector<32x64xf32>
    %24 = vector.shape_cast %21 : vector<32x64xf32> to vector<1x32x64xf32>
    tpu.vector_store %arg4[%c0_6, %c0_7, %c0_8], %24 {strides = array<i32>} : memref<1x32x64xf32, #tpu.memory_space<vmem>>, vector<1x32x64xf32>,
    return
  }
  func.func @transform_0(%arg0: i32) -> (i32, i32, i32) {
    %c0_i32 = arith.constant 0 : i32
    %c0_i32_0 = arith.constant 0 : i32
    %c0_i32_1 = arith.constant 0 : i32
    return %arg0, %c0_i32, %c0_i32_0 : i32, i32, i32
  }
  func.func @transform_1(%arg0: i32) -> (i32, i32) {
    %c0_i32 = arith.constant 0 : i32
    %c0_i32_0 = arith.constant 0 : i32
    %c0_i32_1 = arith.constant 0 : i32
    return %c0_i32, %c0_i32_0 : i32, i32
  }
  func.func @transform_2(%arg0: i32) -> (i32, i32) {
    %c0_i32 = arith.constant 0 : i32
    %c0_i32_0 = arith.constant 0 : i32
    %c0_i32_1 = arith.constant 0 : i32
    return %c0_i32, %c0_i32_0 : i32, i32
  }
  func.func @transform_3(%arg0: i32) -> (i32, i32, i32) {
    %c0_i32 = arith.constant 0 : i32
    %c0_i32_0 = arith.constant 0 : i32
    %c0_i32_1 = arith.constant 0 : i32
    return %arg0, %c0_i32, %c0_i32_0 : i32, i32, i32
  }
}

</mosaic_0001>

<bundles_post_ra>
// kernel: tpu_custom_call.1
= control target key start
LH: loop header
LB: loop body
LE: loop exit
PB: predicated region body
PF: predicated region fallthrough
CT: control target
= control target key end

     0   :  { %8 = vsyncpa [#allocation3], 0  ;;  %s624_s0 = inlined_call_operand.vmem [shape: f32[2,32,3], index: 0, kind: input, shape index: {}]   ;;  %s625_s1 = inlined_call_operand.vmem [shape: f32[3,64], index: 1, kind: input, shape index: {}]   ;;  %s626_s2 = inlined_call_operand.vmem [shape: f32[32,64], index: 2, kind: input, shape index: {}]   ;;  %s627_s3 = inlined_call_operand.hbm [shape: f32[2,32,64], index: 3, kind: output, shape index: {}]  }
   0x1   :  { %10 = vsyncpa [#allocation3 + $0x1], 0  ;;  %s499_s12 = smov 0   ;;  %s501_s13 = smov 0  }
   0x2   :  { %s503_s14 = smov 0   ;;  %s505_s15 = smov 0  }
   0x3 LB: > { %s520_s16 = sadd.s32 4294967295, %s471_s15   ;;  %s347_s17 = sadd.s32 4294967294, %s471_s15   ;;  %s471_s15 = sphi %s505_s15, %s633_s15   ;;  %s467_s14 = sphi %s503_s14, %s632_s14   ;;  %s463_s13 = sphi %s501_s13, %s631_s13   ;;  %s459_s12 = sphi %s499_s12, %s630_s12  }
   0x4   : > { %s524_s18 = sadd.s32 1, %s471_s15   ;;  %s91_s19 = sadd.s32 1, %s467_s14 }
   0x5   : > { %s88_s20 = ssub.s32 %s471_s15, %s524_s18  ;;  %p101_p0 = scmp.ne.s32.totalorder %s467_s14, %s463_s13 }
   0x6   : > { %p89_p1 = scmp.eq.s32.totalorder %s88_s20, 0  ;;  %p102_p2 = scmp.eq.s32.totalorder %s520_s16, 1 }
   0x7   : > { %p107_p3 = scmp.ne.s32.totalorder %s463_s13, %s459_s12  ;;  %p108_p4 = scmp.eq.s32.totalorder %s347_s17, 1 }
   0x8   : > { %s535_s21 = scalar_select %p89_p1, %s467_s14, %s91_s19  }
   0x9   : > { %p537_p5 = por %p102_p2, %p101_p0  ;;  %p541_p6 = por %p108_p4, %p107_p3 }
   0xa   : > { %p350_p7 = scmp.ge.s32.totalorder %s471_s15, 1  ;;  %p140_p8 = scmp.lt.s32.totalorder %s471_s15, 3 }
   0xc   : > { %p141_p9 = pnand %p350_p7, %p140_p8 }
   0xd   : > { %p164_p10 = scmp.lt.s32.totalorder (!%p141_p9), %s520_s16, 1  ;;  %s161_s4 = sand.u32 (!%p141_p9), 1, %s463_s13  }
   0xe   : > { %144 = sbr.rel (%p141_p9) target bundleno = 194 (0xc2), region = 32  ;;  %s351_s5 = sshll.u32 (!%p141_p9), %s161_s4, 5 }
   0xf   : > { %s163_s17 = scalar_lea.vmem (!%p141_p9), [#allocation2], %s351_s5  ;;  %s360_s19 = sshll.u32 (!%p141_p9), %s520_s16, 9 }
  0x10   : > { %s285_s20 = sshll.u32 (!%p141_p9), %s163_s17, 4  ;;  %s476_s30 = smov (!%p141_p9), [#allocation2]   ;;  %s579_s20 = int_to_ptr.vmem [resolvable:$true] %s285_s20 }
  0x11   : > { %s411_s29 = scalar_lea.vmem (!%p141_p9), %s579_s20, 512  ;;  %s415_s5 = sshll.u32 (!%p141_p9), %s476_s30, 4  ;;  %s416_s5 = int_to_ptr.vmem [resolvable:$false] %s415_s5 }
  0x12   : > { %p412_p11 = scmp.ne.s32.totalorder (!%p141_p9), %s579_s20, %s411_s29  ;;  %s417_s6 = scalar_lea.vmem (!%p141_p9), %s416_s5, 1024 }
  0x13   : > { %v473_v0 = vmov 0   ;;  %s165_s24 = scalar_select %p164_p10, %s520_s16, 1  ;;  %v474_v5 = vmov 1   ;;  %v475_v6 = vmov 2   ;;  %v194_v7 = vlaneseq  ;;  %v173_v15 = vld [vmem:[%s625_s1] sm:$0x7] }
  0x14   : > { %406 = vset.pattern.permute.xlu1 %v473_v0  ;;  %405 = vset.pattern.permute.xlu0 %v473_v0  ;;  %v258_v35 = vld [vmem:[%s626_s2] sm:$0xff]  ;;  %v259_v36 = vld [vmem:[%s626_s2 + $0x8] sm:$0xff]  ;;  %vm266_vm0 = vcmask 523264   ;;  %v260_v46 = vld [vmem:[%s626_s2 + $0x10] sm:$0xff]  ;;  %s584_s16 = scalar_lea.sflag [#allocation3], %s161_s4  ;;  %p413_p12 = pnand %p412_p11, %p537_p5 }
  0x15   : > { %s359_s25 = sshll.u32 %s165_s24, 5  ;;  %v195_v10 = vshrl.u32 %v194_v7, 7  ;;  %v261_v53 = vld [vmem:[%s626_s2 + $0x18] sm:$0xff]  ;;  %p418_p0 = scmp.lt.s32.totalorder %s579_s20, %s416_s5 }
  0x16   : > { %s168_s28 = scalar_lea.vmem %s624_s0, %s359_s25  ;;  %p414_p13 = pneg %p413_p12 }
  0x17   : > { %v171_v1 = vld [vmem:[%s168_s28 + $0x10] sm:$0xff]  ;;  %v169_v2 = vld [vmem:[%s168_s28] sm:$0xff]  ;;  %v172_v3 = vld [vmem:[%s168_s28 + $0x18] sm:$0xff]  ;;  %v220_v13 = vsub.s32 1, %v195_v10  ;;  %v196_v14 = vsub.s32 0, %v195_v10  ;;  %v248_v19 = vsub.s32 2, %v195_v10  ;;  %p419_p1 = scmp.lt.s32.totalorder %s417_s6, %s411_s29 }
  0x18   : > { %186 = vperm.xlu1 %406, %v171_v1   ;;  %176 = vperm.xlu0 %405, %v169_v2   ;;  %v170_v4 = vld [vmem:[%s168_s28 + $0x8] sm:$0xff]  ;;  %s577_s28 = scalar_lea.hbm %s627_s3, %s360_s19 }
  0x19   : > { %v221_v18 = vrot.slane %v173_v15, %v220_v13  ;;  %v197_v20 = vrot.slane %v173_v15, %v196_v14  ;;  %v249_v27 = vrot.slane %v173_v15, %v248_v19  ;;  %p420_p2 = por %p419_p1, %p418_p0 }
  0x1b   : > { %p421_p3 = pnand %p420_p2, %p414_p13 }
  0x1c   : > { %191 = vperm.xlu1 %406, %v172_v3   ;;  %181 = vperm.xlu0 %405, %v170_v4  }
  0x20   : > { %408 = vset.pattern.permute.xlu1 %v474_v5  ;;  %407 = vset.pattern.permute.xlu0 %v474_v5 }
  0x21   : > { %207 = vperm.xlu1 %408, %v170_v4   ;;  %203 = vperm.xlu0 %407, %v169_v2  }
  0x25   : > { %211 = vperm.xlu1 %408, %v171_v1   ;;  %215 = vperm.xlu0 %407, %v172_v3  }
  0x29   : > { %409 = vset.pattern.permute.xlu1 %v475_v6  ;;  %410 = vset.pattern.permute.xlu0 %v475_v6 }
  0x2a   : > { %231 = vperm.xlu1 %409, %v169_v2   ;;  %235 = vperm.xlu0 %410, %v170_v4  }
  0x2e   : > { %239 = vperm.xlu1 %409, %v171_v1  }
  0x32   : > { %243 = vperm.xlu1 %409, %v172_v3  }
  0x93   : > { %v187_v8 = vpop.permute.xlu1 %186  ;;  %v177_v9 = vpop.permute.xlu0 %176 }
  0x94   : > { %v198_v25 = vmul.f32 %v197_v20, %v177_v9  ;;  %v200_v37 = vmul.f32 %v197_v20, %v187_v8 }
  0x97   : > { %v192_v11 = vpop.permute.xlu1 %191  ;;  %v182_v12 = vpop.permute.xlu0 %181 }
  0x98   : > { %v199_v23 = vmul.f32 %v197_v20, %v182_v12  ;;  %v201_v47 = vmul.f32 %v197_v20, %v192_v11 }
  0x9c   : > { %v208_v16 = vpop.permute.xlu1 %207  ;;  %v204_v17 = vpop.permute.xlu0 %203 }
  0x9d   : > { %v223_v24 = vmul.f32 %v221_v18, %v208_v16  ;;  %v222_v26 = vmul.f32 %v221_v18, %v204_v17 }
  0x9f   : > { %v227_v28 = vadd.f32 %v223_v24, %v199_v23  ;;  %v226_v31 = vadd.f32 %v222_v26, %v198_v25 }
  0xa0   : > { %v212_v21 = vpop.permute.xlu1 %211  ;;  %v216_v22 = vpop.permute.xlu0 %215 }
  0xa1   : > { %v224_v32 = vmul.f32 %v221_v18, %v212_v21  ;;  %v225_v40 = vmul.f32 %v221_v18, %v216_v22 }
  0xa3   : > { %v228_v42 = vadd.f32 %v224_v32, %v200_v37  ;;  %v229_v50 = vadd.f32 %v225_v40, %v201_v47 }
  0xa5   : > { %v232_v29 = vpop.permute.xlu1 %231  ;;  %v236_v30 = vpop.permute.xlu0 %235 }
  0xa6   : > { %v250_v33 = vmul.f32 %v249_v27, %v232_v29  ;;  %v251_v34 = vmul.f32 %v249_v27, %v236_v30 }
  0xa8   : > { %v254_v38 = vadd.f32 %v250_v33, %v226_v31  ;;  %v255_v39 = vadd.f32 %v251_v34, %v227_v28 }
  0xa9   : > { %v240_v41 = vpop.permute.xlu1 %239 }
  0xaa   : > { %v262_v43 = vadd.f32 %v258_v35, %v254_v38  ;;  %v263_v44 = vadd.f32 %v259_v36, %v255_v39  ;;  %v252_v45 = vmul.f32 %v249_v27, %v240_v41 }
  0xac   : > { %267 = vst.msk [vmem:[%s163_s17] sm:$0xff] %vm266_vm0, %v262_v43  ;;  %268 = vst.msk [vmem:[%s163_s17 + $0x8] sm:$0xff] %vm266_vm0, %v263_v44  ;;  %v256_v48 = vadd.f32 %v252_v45, %v228_v42 }
  0xad   : > { %v244_v49 = vpop.permute.xlu1 %243 }
  0xae   : > { %v264_v51 = vadd.f32 %v260_v46, %v256_v48  ;;  %v253_v52 = vmul.f32 %v249_v27, %v244_v49 }
  0xb0   : > { %269 = vst.msk [vmem:[%s163_s17 + $0x10] sm:$0xff] %vm266_vm0, %v264_v51  ;;  %v257_v54 = vadd.f32 %v253_v52, %v229_v50 }
  0xb2   : > { %v265_v55 = vadd.f32 %v261_v53, %v257_v54 }
  0xb4   : > { %270 = vst.msk [vmem:[%s163_s17 + $0x18] sm:$0xff] %vm266_vm0, %v265_v55 }
  0xb5   : > { %424 = shalt.err (!%p421_p3)
}
  0xb6   : > { %s425_s4 = scalar_lea.hbm %s577_s28, 512  ;;  %s429_s9 = scalar_lea.hbm %s627_s3, 1024 }
  0xb7   : > { %p426_p4 = scmp.ne.s32.totalorder %s577_s28, %s425_s4  ;;  %p430_p9 = scmp.lt.s32.totalorder %s577_s28, %s627_s3 }
  0xb8   : > { %p431_p10 = scmp.lt.s32.totalorder %s429_s9, %s425_s4 }
  0xb9   : > { %p427_p7 = pnand %p426_p4, %p537_p5 }
  0xba   : > { %p432_p11 = por %p431_p10, %p430_p9 }
  0xbb   : > { %p428_p8 = pneg %p427_p7 }
  0xbd   : > { %p433_p12 = pnand %p432_p11, %p428_p8 }
  0xbf   : > { %436 = shalt.err (!%p433_p12)
}
  0xc0   : > { %s477_s17 = smov 128   ;;  %s478_s19 = smov 8  }
  0xc1   : > { %361 = dma.vmem_to_hbm [thread:$0]  (%p537_p5), %s579_s20, 512, %s577_s28, %s584_s16, %s477_s17, %s477_s17, %s478_s19  }
  0xc2 PF: > { %p367_p13 = scmp.ge.s32.totalorder %s471_s15, 2  ;;  %s300_s24 = sand.u32 1, %s459_s12  }
  0xc3   : > { %s301_s25 = scalar_lea.sflag [#allocation3], %s300_s24 }
  0xc4   : > { %p364_p0 = pnand %p367_p13, %p541_p6 }
  0xc6   : > { %p365_p1 = pneg %p364_p0 }
  0xc8   : > { %454 = dma.done.wait (%p365_p1), %s301_s25, 512  }
  0xc9   : > { %456 = vsyncadd (%p365_p1), %s301_s25, 4294966784  ;;  %p13_p2 = scmp.ge.s32.totalorder %s524_s18, 4   ;;  %s630_s12 = smov %s463_s13 }
  0xca   : > { %s631_s13 = smov %s467_s14  ;;  %s632_s14 = smov %s535_s21 }
  0xcb   : > { %s633_s15 = smov %s524_s18  ;;  %15 = sbr.rel (!%p13_p2) target bundleno = 3 (0x3), region = 67 }
  0xd0   :  { %306 = vsyncpa [#allocation3], 1 }
  0xd1   :  { %308 = vsyncpa [#allocation3 + $0x1], 1 }

</bundles_post_ra>
